<compile_context>
chip_gen: v7x
topology: tpu7x:2x2x1
jax: 0.10.0
libtpu: 0.0.40
codegen_flags: <defaults>
</compile_context>

<pallas_src>
import math
import functools

import jax
import jax.numpy as jnp
from jax.experimental import pallas as pl
from jax.experimental.pallas import tpu as pltpu

_MIB = 1024 * 1024


def _round_up(n, m):
    return ((n + m - 1) // m) * m


def _vmem_capacity_bytes():
    """Per-core VMEM capacity; conservative (64 MiB, v7x) if the query fails."""
    try:
        cap = int(getattr(pltpu.get_tpu_info(), "vmem_capacity_bytes", 64 * _MIB))
    except Exception:
        cap = 64 * _MIB
    return min(max(cap, 16 * _MIB), 128 * _MIB)


def _per_row_vmem_bytes(D, H):
    """Conservative VMEM bytes per batch row for the chosen layouts."""
    d_lanes = _round_up(max(D, 1), 128)
    h_lanes = _round_up(max(H, 1), 128)
    return 4 * (2 * d_lanes      # x block: lanes padded to 128, double-buffered
                + 2 * 8          # lane-dense out block: 8 sublanes, double-buffered
                + 3 * h_lanes    # (tb, H) hidden activation + compiler temporaries
                + 2 * 128)       # (tb, 1) column intermediates (logit, sigmoid)


def _choose_tile_b(B, D, H, budget_bytes):
    tb_max = max(budget_bytes // _per_row_vmem_bytes(D, H), 8)
    if tb_max >= 1024:
        tb_max = (tb_max // 1024) * 1024
    else:
        tb_max = max((tb_max // 8) * 8, 8)
    target = _round_up(B, 8)
    if target > 4096:
        # Keep >= 2 tiles so the "parallel" grid axis can feed both TCs on v7x.
        target = _round_up(-(-target // 2), 1024)
    return max(min(tb_max, target), 8)


def _attack_mlp_kernel(x_ref, w1_ref, b1_ref, w2_ref, b2_ref, o_ref):
    # Layer 1: (tb, D) @ (D, H) on the MXU, f32 accumulation; bias + ReLU on the VPU.
    h = jnp.dot(x_ref[...], w1_ref[...], preferred_element_type=jnp.float32)
    h = jnp.maximum(h + b1_ref[...], 0.0)
    # Layer 2: (tb, H) @ (H, 1) also on the (near-idle) MXU instead of an XLU lane-reduce.
    z = jnp.dot(h, w2_ref[...], preferred_element_type=jnp.float32)
    z = z + b2_ref[0, 0]                       # scalar bias from SMEM
    s = jax.nn.sigmoid(z)                      # EUP exp
    # Lane-dense store: relayout the (tb, 1) column into the dense output block.
    o_ref[...] = s.reshape(o_ref.shape).astype(o_ref.dtype)


@functools.partial(jax.jit, static_argnames=("tile_b",))
def attack_model_forward(x, w1, b1, w2, b2, *, tile_b=None):
    """x: (B, 1, input_size) f32 -> (B, 1) f32 (matches Attack_model.forward)."""
    x2d = jnp.squeeze(x, axis=1)               # x.squeeze(1): metadata-only
    B, D = x2d.shape
    H = w1.shape[1]

    cap = _vmem_capacity_bytes()
    budget = min(int(cap * 0.70), 100 * _MIB)
    vmem_limit = int(min(budget + 16 * _MIB, cap - 4 * _MIB))

    tb = int(tile_b) if tile_b is not None else _choose_tile_b(B, D, H, budget)
    tb = max(8, _round_up(tb, 8))
    if tb < B:
        # Multi-tile: force tb % 1024 == 0 so the lane-dense (k*128, 128) output
        # layout keeps fully (8,128)-aligned blocks.
        tb = _round_up(tb, 1024)
    num_tiles = -(-B // tb)

    if num_tiles > 1:
        rows_per_tile = tb // 128
        out_shape2d = (num_tiles * rows_per_tile, 128)
        out_block = (rows_per_tile, 128)
    else:
        out_shape2d = (1, tb)
        out_block = (1, tb)

    b1_2d = b1.reshape(1, H)
    w2_col = w2.reshape(H, 1)
    b2_2d = b2.reshape(1, 1)

    out = pl.pallas_call(
        _attack_mlp_kernel,
        out_shape=jax.ShapeDtypeStruct(out_shape2d, jnp.float32),
        grid=(num_tiles,),
        in_specs=[
            pl.BlockSpec((tb, D), lambda i: (i, 0)),            # x: streamed per tile
            pl.BlockSpec((D, H), lambda i: (0, 0)),             # w1: VMEM-resident
            pl.BlockSpec((1, H), lambda i: (0, 0)),             # b1: VMEM-resident
            pl.BlockSpec((H, 1), lambda i: (0, 0)),             # w2: VMEM-resident
            pl.BlockSpec(memory_space=pltpu.MemorySpace.SMEM),  # b2 scalar in SMEM
        ],
        out_specs=pl.BlockSpec(out_block, lambda i: (i, 0)),
        compiler_params=pltpu.CompilerParams(
            dimension_semantics=("parallel",),   # batch tiles shard across TCs (v7x)
            vmem_limit_bytes=vmem_limit,         # generation-aware VMEM budget
        ),
        cost_estimate=pl.CostEstimate(
            flops=2 * B * D * H + 2 * B * H,
            transcendentals=B,
            bytes_accessed=(B * D + D * H + 2 * H + 1 + B) * 4,
        ),
    )(x2d, w1, b1_2d, w2_col, b2_2d)

    # Flatten (row-major order == batch order), drop pad rows of the ragged last tile.
    return out.reshape(-1)[:B].reshape(B, 1)


def init_params(key, input_size, hidden=64):
    """Deterministic init mimicking PyTorch nn.Linear defaults (uniform +/- 1/sqrt(fan_in))."""
    k1, k2, k3, k4 = jax.random.split(key, 4)
    bound1 = 1.0 / math.sqrt(input_size)
    bound2 = 1.0 / math.sqrt(hidden)
    w1 = jax.random.uniform(k1, (input_size, hidden), jnp.float32, -bound1, bound1)
    b1 = jax.random.uniform(k2, (hidden,), jnp.float32, -bound1, bound1)
    w2 = jax.random.uniform(k3, (hidden, 1), jnp.float32, -bound2, bound2)
    b2 = jax.random.uniform(k4, (1,), jnp.float32, -bound2, bound2)
    return w1, b1, w2, b2


def _reference(x, w1, b1, w2, b2):
    return jax.nn.sigmoid(jnp.maximum(jnp.squeeze(x, 1) @ w1 + b1, 0.0) @ w2 + b2)


if __name__ == "__main__":
    key = jax.random.PRNGKey(0)
    k_x, k_p, k_big = jax.random.split(key, 3)

    # CIFAR-10 MIA attack model: input is the 10-class posterior, shape (B, 1, 10).
    batch, input_size = 8, 10
    w1, b1, w2, b2 = init_params(k_p, input_size)

    # Small batch (single tile, lane-sparse-but-full output block).
    x = jax.random.uniform(k_x, (batch, 1, input_size), jnp.float32)
    out = jax.block_until_ready(attack_model_forward(x, w1, b1, w2, b2))
    ref = _reference(x, w1, b1, w2, b2)
    assert out.shape == (batch, 1)
    assert jnp.allclose(out, ref, atol=1e-5), "mismatch vs reference (small batch)"

    # Larger batch: default tiling -> 2 tiles + ragged last tile (no host-side pad copy).
    big_batch = 6000
    x_big = jax.random.uniform(k_big, (big_batch, 1, input_size), jnp.float32)
    out_big = jax.block_until_ready(attack_model_forward(x_big, w1, b1, w2, b2))
    ref_big = _reference(x_big, w1, b1, w2, b2)
    assert out_big.shape == (big_batch, 1)
    assert jnp.allclose(out_big, ref_big, atol=1e-5), "mismatch vs reference (large batch)"

    # Explicit small tile: 6 pipelined tiles, exercises the multi-tile lane-dense output path.
    out_tiled = jax.block_until_ready(
        attack_model_forward(x_big, w1, b1, w2, b2, tile_b=1024))
    assert out_tiled.shape == (big_batch, 1)
    assert jnp.allclose(out_tiled, ref_big, atol=1e-5), "mismatch vs reference (tiled)"

    print("KERNEL_OK")
</pallas_src>

<mosaic_0001>
module attributes {stable_mosaic.version = 11 : i64} {
  func.func @_attack_mlp_kernel(%arg0: i32, %arg1: memref<8x10xf32, #tpu.memory_space<vmem>>, %arg2: memref<10x64xf32, #tpu.memory_space<vmem>>, %arg3: memref<1x64xf32, #tpu.memory_space<vmem>>, %arg4: memref<64x1xf32, #tpu.memory_space<vmem>>, %arg5: memref<1x1xf32, #tpu.memory_space<smem>>, %arg6: memref<1x8xf32, #tpu.memory_space<vmem>>) attributes {dimension_semantics = [#tpu.dimension_semantics<parallel>], iteration_bounds = array<i64: 1>, scalar_prefetch = 0 : i64, scratch_operands = 0 : i64, tpu.core_type = #tpu.core_type<tc>, window_params = [{transform_indices = @transform_0, window_bounds = array<i64: 8, 10>}, {pipeline_mode = #tpu.pipeline_mode<synchronous>, transform_indices = @transform_1, window_bounds = array<i64: 10, 64>}, {pipeline_mode = #tpu.pipeline_mode<synchronous>, transform_indices = @transform_2, window_bounds = array<i64: 1, 64>}, {pipeline_mode = #tpu.pipeline_mode<synchronous>, transform_indices = @transform_3, window_bounds = array<i64: 64, 1>}, {transform_indices = @transform_4, window_bounds = array<i64: 1, 1>}, {transform_indices = @transform_5, window_bounds = array<i64: 1, 8>}]} {
    %c0 = arith.constant 0 : index
    %c0_0 = arith.constant 0 : index
    %0 = vector.load %arg1[%c0, %c0_0] : memref<8x10xf32, #tpu.memory_space<vmem>>, vector<8x10xf32>
    %c0_1 = arith.constant 0 : index
    %c0_2 = arith.constant 0 : index
    %1 = vector.load %arg2[%c0_1, %c0_2] : memref<10x64xf32, #tpu.memory_space<vmem>>, vector<10x64xf32>
    %cst = arith.constant dense<0.000000e+00> : vector<8x64xf32>
    %2 = tpu.matmul %0, %1, %cst {dimension_numbers = #tpu.dot_dimension_numbers<[1], [0], [0], [1], [0, 0, 1, 1], [], []>} : vector<8x10xf32>, vector<10x64xf32>, vector<8x64xf32> -> vector<8x64xf32>
    %c0_3 = arith.constant 0 : index
    %c0_4 = arith.constant 0 : index
    %3 = vector.load %arg3[%c0_3, %c0_4] : memref<1x64xf32, #tpu.memory_space<vmem>>, vector<1x64xf32>
    %4 = vector.broadcast %3 : vector<1x64xf32> to vector<8x64xf32>
    %5 = arith.addf %2, %4 : vector<8x64xf32>
    %cst_5 = arith.constant 0.000000e+00 : f32
    %6 = vector.broadcast %cst_5 : f32 to vector<8x64xf32>
    %7 = arith.maximumf %5, %6 : vector<8x64xf32>
    %c0_6 = arith.constant 0 : index
    %c0_7 = arith.constant 0 : index
    %8 = vector.load %arg4[%c0_6, %c0_7] : memref<64x1xf32, #tpu.memory_space<vmem>>, vector<64x1xf32>
    %cst_8 = arith.constant dense<0.000000e+00> : vector<8x1xf32>
    %9 = tpu.matmul %7, %8, %cst_8 {dimension_numbers = #tpu.dot_dimension_numbers<[1], [0], [0], [1], [0, 0, 1, 1], [], []>} : vector<8x64xf32>, vector<64x1xf32>, vector<8x1xf32> -> vector<8x1xf32>
    %c0_9 = arith.constant 0 : index
    %c0_10 = arith.constant 0 : index
    %10 = memref.load %arg5[%c0_9, %c0_10] : memref<1x1xf32, #tpu.memory_space<smem>>
    %11 = vector.broadcast %10 : f32 to vector<8x1xf32>
    %12 = arith.addf %9, %11 : vector<8x1xf32>
    %13 = arith.negf %12 : vector<8x1xf32>
    %14 = math.exp %13 : vector<8x1xf32>
    %cst_11 = arith.constant 1.000000e+00 : f32
    %15 = vector.broadcast %cst_11 : f32 to vector<8x1xf32>
    %16 = arith.addf %15, %14 : vector<8x1xf32>
    %17 = arith.divf %15, %16 : vector<8x1xf32>
    %18 = vector.shape_cast %17 : vector<8x1xf32> to vector<1x8xf32>
    %c0_12 = arith.constant 0 : index
    %c0_13 = arith.constant 0 : index
    %19 = vector.load %arg6[%c0_12, %c0_13] : memref<1x8xf32, #tpu.memory_space<vmem>>, vector<1x8xf32>
    tpu.vector_store %arg6[%c0_12, %c0_13], %18 {strides = array<i32>} : memref<1x8xf32, #tpu.memory_space<vmem>>, vector<1x8xf32>,
    return
  }
  func.func @transform_0(%arg0: i32) -> (i32, i32) {
    %c0_i32 = arith.constant 0 : i32
    %c0_i32_0 = arith.constant 0 : i32
    return %arg0, %c0_i32 : i32, i32
  }
  func.func @transform_1(%arg0: i32) -> (i32, i32) {
    %c0_i32 = arith.constant 0 : i32
    %c0_i32_0 = arith.constant 0 : i32
    %c0_i32_1 = arith.constant 0 : i32
    return %c0_i32, %c0_i32_0 : i32, i32
  }
  func.func @transform_2(%arg0: i32) -> (i32, i32) {
    %c0_i32 = arith.constant 0 : i32
    %c0_i32_0 = arith.constant 0 : i32
    %c0_i32_1 = arith.constant 0 : i32
    return %c0_i32, %c0_i32_0 : i32, i32
  }
  func.func @transform_3(%arg0: i32) -> (i32, i32) {
    %c0_i32 = arith.constant 0 : i32
    %c0_i32_0 = arith.constant 0 : i32
    %c0_i32_1 = arith.constant 0 : i32
    return %c0_i32, %c0_i32_0 : i32, i32
  }
  func.func @transform_4(%arg0: i32) -> (i32, i32) {
    %c0_i32 = arith.constant 0 : i32
    %c0_i32_0 = arith.constant 0 : i32
    %c0_i32_1 = arith.constant 0 : i32
    return %c0_i32, %c0_i32_0 : i32, i32
  }
  func.func @transform_5(%arg0: i32) -> (i32, i32) {
    %c0_i32 = arith.constant 0 : i32
    %c0_i32_0 = arith.constant 0 : i32
    return %arg0, %c0_i32 : i32, i32
  }
}

</mosaic_0001>

<bundles_post_ra>
// kernel: attack_model_forward.1
= control target key start
LH: loop header
LB: loop body
LE: loop exit
PB: predicated region body
PF: predicated region fallthrough
CT: control target
= control target key end

     0   :  { %vm36_vm0 = vcmask 1041408   ;;  %v322_v2 = vmov 0.0|0.0   ;;  %vm323_vm1 = vmmov 1   ;;  %vm324_vm3 = vmmov 0   ;;  %s409_s0 = inlined_call_operand.vmem [shape: f32[8,10], index: 0, kind: input, shape index: {}]   ;;  %s410_s1 = inlined_call_operand.vmem [shape: f32[10,64], index: 1, kind: input, shape index: {}]   ;;  %s411_s2 = inlined_call_operand.vmem [shape: f32[1,64], index: 2, kind: input, shape index: {}]   ;;  %s412_s3 = inlined_call_operand.vmem [shape: f32[64,1], index: 3, kind: input, shape index: {}]   ;;  %s413_s4 = inlined_call_operand.<no memory space> [shape: f32[1,1], index: 4, kind: input, shape index: {}]   ;;  %s414_s5 = inlined_call_operand.hbm [shape: f32[1,8], index: 5, kind: output, shape index: {}]  }
   0x1   :  { %v23_v0 = vld [vmem:[%s410_s1] sm:$0xff]  ;;  %v24_v1 = vld [vmem:[%s410_s1 + $0x8] sm:$0x3]  ;;  %271 = vmatprep.subr.bf16.mxu0 %v322_v2  ;;  %vm273_vm2 = vmpackc.low %vm36_vm0, %vm323_vm1  ;;  %275 = vmatprep.subr.bf16.mxu1 %v322_v2  ;;  %v325_v5 = vmov 0.0   ;;  %vm32_vm4 = vcmask 80896  }
   0x2   :  { %v272_v3 = vpack.c.bf16 %v24_v1, %v23_v0  ;;  %v111_v4 = vld [vmem:[%s412_s3] sm:$0xff]  ;;  %249 = vmatprep.mubr.msk.f32.mxu0 %vm324_vm3, %v325_v5  ;;  %v112_v6 = vld [vmem:[%s412_s3 + $0x8] sm:$0xff]  ;;  %v113_v7 = vld [vmem:[%s412_s3 + $0x10] sm:$0xff]  ;;  %268 = vmatprep.mubr.msk.f32.mxu1 %vm324_vm3, %v325_v5 }
   0x3   :  { %v114_v8 = vld [vmem:[%s412_s3 + $0x18] sm:$0xff]  ;;  %v22_v9 = vld [vmem:[%s409_s0] sm:$0xff]  ;;  %v276_v10 = vpack.c.bf16 %v112_v6, %v111_v4 }
   0x4   :  { %274 = vmatpush3.bf16.msk.msra.mxu0 %vm273_vm2, %v272_v3 }
   0x5   :  { %11 = vsyncpa [#allocation4], 0  ;;  %277 = vmatpush3.bf16.msra.mxu1 %v276_v10  ;;  %v279_v11 = vpack.c.bf16 %v114_v8, %v113_v7  ;;  %v115_v12 = vld [vmem:[%s412_s3 + $0x20] sm:$0xff]  ;;  %v116_v13 = vld [vmem:[%s412_s3 + $0x28] sm:$0xff]  ;;  %vm121_vm5 = vcmask 523264   ;;  %v326_v23 = vmov 0   ;;  %v120_v24 = vstv %s413_s4 }
   0x6   :  { %278 = vmatprep.subr.bf16.mxu1 %v322_v2  ;;  %v282_v14 = vpack.c.bf16 %v116_v13, %v115_v12  ;;  %v117_v15 = vld [vmem:[%s412_s3 + $0x30] sm:$0xff]  ;;  %v118_v16 = vld [vmem:[%s412_s3 + $0x38] sm:$0xff]  ;;  %v228_v18 = vld [vmem:[%s411_s2] ss:$0 sm:$0xff]  ;;  %293 = vset.pattern.permute.xlu0 %v326_v23  ;;  %v205_v32 = vlaneseq  ;;  %s327_s2 = smov [#allocation3]   ;;  %vm212_vm6 = vcmask 57344  }
   0x7   :  { %250 = vmatmul.mubr.msk.f32.vlgmr.msra.gmra.mrb[0].mxu0 %vm32_vm4, %v22_v9  ;;  %v285_v17 = vpack.c.bf16 %v118_v16, %v117_v15  ;;  %s220_s3 = sshll.u32 %s327_s2, 4  ;;  %s221_s3 = int_to_ptr.vmem [resolvable:$true] %s220_s3 }
   0x8   :  { %v206_v33 = vand.u32 127, %v205_v32  ;;  %v208_v34 = vshrl.u32 %v205_v32, 7  ;;  %s298_s4 = scalar_lea.vmem %s221_s3, 16  ;;  %s302_s17 = scalar_lea.vmem %s221_s3, 32 }
   0x9   :  { %280 = vmatpush3.bf16.msra.mxu1 %v279_v11  ;;  %p299_p0 = scmp.ne.s32.totalorder %s221_s3, %s298_s4  ;;  %p303_p1 = scmp.lt.s32.totalorder %s221_s3, %s221_s3 }
   0xa   :  { %281 = vmatprep.subr.bf16.mxu1 %v322_v2  ;;  %v209_v35 = vsub.s32 %v206_v33, %v208_v34  ;;  %p304_p2 = scmp.lt.s32.totalorder %s302_s17, %s298_s4 }
   0xc   :  { %p305_p3 = por %p304_p2, %p303_p1 }
   0xd   :  { %283 = vmatpush3.bf16.msra.mxu1 %v282_v14 }
   0xe   :  { %284 = vmatprep.subr.bf16.mxu1 %v322_v2  ;;  %p306_p4 = pnand %p305_p3, %p299_p0 }
  0x11   :  { %286 = vmatpush3.bf16.msra.mxu1 %v285_v17 }
  0xda   :  { %v106_v19 = vpop.f32.mrb[0].mxu0 }
  0xdb   :  { %v107_v20 = vadd.f32 %v228_v18, %v106_v19  ;;  %v251_v21 = vpop.f32.mrb[1].mxu0 }
  0xdd   :  { %v110_v22 = vmax.f32 %v107_v20, 0.0 }
  0xdf   :  { %269 = vmatmul.mubr.msk.f32.vlgmr.msra.gmra.mrb[0].mxu1 %vm121_vm5, %v110_v22 }
 0x1b2   :  { %v191_v25 = vpop.f32.mrb[0].mxu1 }
 0x1b3   :  { %v192_v26 = vadd.f32 %v191_v25, %v120_v24  ;;  %v270_v27 = vpop.f32.mrb[1].mxu1 }
 0x1b5   :  { %v232_v28 = vmul.f32 -1.442695, %v192_v26 }
 0x1b7   :  { %294 = vpow2.f32 %v232_v28 }
 0x1c1   :  { %v295_v29 = vpop.eup %294 }
 0x1c2   :  { %v198_v30 = vadd.f32 1.0, %v295_v29 }
 0x1c4   :  { %296 = vrcp.f32 %v198_v30 }
 0x1ce   :  { %v297_v31 = vpop.eup %296 }
 0x1cf   :  { %203 = vperm.xlu0 %293, %v297_v31  }
 0x24e   :  { %v204_v36 = vpop.permute.xlu0 %203 }
 0x24f   :  { %v210_v37 = vrot.slane %v204_v36, %v209_v35 }
 0x251   :  { %213 = vst.msk [vmem:[#allocation3] sm:$0x1] %vm212_vm6, %v210_v37 }
 0x252   :  { %309 = shalt.err (!%p306_p4)
}
 0x253   :  { %s310_s20 = scalar_lea.hbm %s414_s5, 16 }
 0x254   :  { %p311_p5 = scmp.ne.s32.totalorder %s414_s5, %s310_s20  ;;  %p314_p6 = scmp.lt.u32.totalorder %s310_s20, %s414_s5 }
 0x256   :  { %p316_p7 = pnand %p314_p6, %p311_p5 }
 0x258   :  { %319 = shalt.err (!%p316_p7)
}
 0x259   :  { %223 = dma.vmem_to_hbm [thread:$0]  %s221_s3, 16, %s414_s5, [#allocation4]  }
 0x25a   :  { %320 = dma.done.wait [#allocation4], 16  }
 0x25b   :  { %321 = vsyncadd [#allocation4], 4294967280 }
 0x25c   :  { %227 = vsyncpa [#allocation4], 1 }

</bundles_post_ra>
